<compile_context>
chip_gen: v6e
topology: v6e:2x2x1
jax: 0.10.0
libtpu: 0.0.40
codegen_flags: <defaults>
</compile_context>

<pallas_src>
import functools

import jax
import jax.numpy as jnp
from jax.experimental import pallas as pl
from jax.experimental.pallas import tpu as pltpu


# f32 sublane tile is 8 rows; packed dtypes pack more rows per sublane tile.
_SUBLANE_TILE = {4: 8, 2: 16, 1: 32}


def _chunks_per_input_for_device():
    """How many concurrent DMAs to issue per input, by TPU generation."""
    try:
        kind = jax.devices()[0].device_kind.lower()
    except Exception:  # pragma: no cover - defensive
        return 4
    if "v7" in kind:
        return 8   # widest gap between one DMA stream and the ~3.2 TB/s roofline
    if "v6" in kind:
        return 4
    if "v5" in kind:
        return 2   # ~0.8 TB/s HBM: a couple of streams already hit roofline
    return 4


def _chunk_bounds(c, n_chunks, align):
    """Split `c` channels into <= n_chunks slabs whose starts/sizes are
    multiples of `align` (align == 1 for the NCHW major-dim path)."""
    units = c // align
    n = max(1, min(n_chunks, units))
    base, rem = divmod(units, n)
    bounds = []
    start = 0
    for j in range(n):
        size = (base + (1 if j < rem else 0)) * align
        bounds.append((start, size))
        start += size
    assert start == c
    return bounds


def _slice_c(ref, start, size, ndim):
    """Static channel-slab view of an HBM ref (3D flattened or 4D NCHW)."""
    if ndim == 3:
        return ref.at[:, start:start + size, :]
    return ref.at[:, start:start + size, :, :]


def _concat_dma_kernel(copy_plan, ndim, *refs):
    """refs = (*val_hbm_refs, vals_out_hbm_ref, dma_sems).

    copy_plan[i] is a list of (src_start, dst_start, size) channel slabs for
    input i (all Python ints, so every slice below is static).  All DMAs are
    started before any wait so several copies are in flight concurrently.
    """
    n_in = len(copy_plan)
    in_refs = refs[:n_in]
    out_ref = refs[n_in]
    sems = refs[n_in + 1]

    copies = []
    k = 0
    for i, chunks in enumerate(copy_plan):
        for (src_start, dst_start, size) in chunks:
            cp = pltpu.make_async_copy(
                _slice_c(in_refs[i], src_start, size, ndim),
                _slice_c(out_ref, dst_start, size, ndim),
                sems.at[k],
            )
            cp.start()
            copies.append(cp)
            k += 1
    for cp in copies:
        cp.wait()


def concat_qat(x, dimension=1, flatten_spatial=True):
    """x: list of (vals NCHW, rexp (1,C,1,1)) pairs (the `.get()` payload of a
    QAT tensor).  Returns (vals, rexp) concatenated along the channel dim,
    matching ConcatQAT.forward."""
    assert dimension == 1, "ConcatQAT is used with dim=1 (channels, NCHW)"
    assert len(x) >= 1

    # Skip zero-channel inputs (avoid zero-length DMAs); they contribute
    # nothing to either concat result.
    vals = [v for v, _ in x if v.shape[1] > 0]
    rexps = [r for _, r in x if r.shape[1] > 0]
    assert len(vals) >= 1, "ConcatQAT needs at least one non-empty input"

    N, _, H, W = vals[0].shape
    dtype = vals[0].dtype
    for v, r in zip(vals, rexps):
        assert v.ndim == 4 and v.shape[0] == N and v.shape[2:] == (H, W), (
            "all ConcatQAT inputs must share N, H, W")
        assert v.dtype == dtype, "all ConcatQAT inputs must share dtype"
        assert r.shape == (1, v.shape[1], 1, 1), "rexp must be (1, C, 1, 1)"

    # rexp is tiny (C floats); plain XLA concat is negligible.
    rout = jnp.concatenate(rexps, axis=1)

    # Single (non-empty) input: concat is the identity on vals.
    if len(vals) == 1:
        return vals[0], rout

    c_sizes = tuple(int(v.shape[1]) for v in vals)
    c_total = sum(c_sizes)
    n_in = len(vals)
    itemsize = jnp.dtype(dtype).itemsize
    sublane = _SUBLANE_TILE.get(itemsize, 8)

    # Lane-dense fast path: flatten spatial dims so the minor dim is H*W
    # instead of W (which gets padded to 128 lanes in the tiled HBM layout).
    # Only valid when every channel offset stays sublane-tile aligned, since
    # C becomes the sublane dim of the flattened arrays.
    use_flat = flatten_spatial and all(c % sublane == 0 for c in c_sizes)
    if use_flat:
        ins = [v.reshape(N, c, H * W) for v, c in zip(vals, c_sizes)]
        out_shape = (N, c_total, H * W)
        ndim = 3
        align = sublane
    else:
        ins = vals
        out_shape = (N, c_total, H, W)
        ndim = 4
        align = 1  # C is a major dim: any offset is tile-safe.

    # Static per-input chunk plan: several concurrent DMAs per input.
    n_chunks = _chunks_per_input_for_device()
    copy_plan = []
    out_off = 0
    for c in c_sizes:
        bounds = _chunk_bounds(c, n_chunks, align)
        copy_plan.append([(s, out_off + s, sz) for (s, sz) in bounds])
        out_off += c
    total_copies = sum(len(chunks) for chunks in copy_plan)

    kernel = functools.partial(_concat_dma_kernel, copy_plan, ndim)

    # read + write every payload byte once.
    bytes_accessed = 2 * N * c_total * H * W * itemsize

    vout = pl.pallas_call(
        kernel,
        out_shape=jax.ShapeDtypeStruct(out_shape, dtype),
        # Everything stays in HBM; the kernel moves data with strided DMAs.
        in_specs=[pl.BlockSpec(memory_space=pl.ANY)] * n_in,
        out_specs=pl.BlockSpec(memory_space=pl.ANY),
        scratch_shapes=[pltpu.SemaphoreType.DMA((total_copies,))],
        cost_estimate=pl.CostEstimate(
            flops=0, transcendentals=0, bytes_accessed=bytes_accessed),
    )(*ins)

    if use_flat:
        vout = vout.reshape(N, c_total, H, W)

    # TODO(synk): the QAT container round-trip (x[0].set(vals, rexp)) is pure
    # Python bookkeeping in the original module; we return the (vals, rexp)
    # payload directly.
    return vout, rout


if __name__ == "__main__":
    key = jax.random.PRNGKey(0)
    keys = jax.random.split(key, 8)

    # --- Primary (lane-dense, chunked-DMA) path --------------------------
    # Channel counts are multiples of the f32 sublane tile (8), so the
    # concat runs on flattened (N, C, H*W) arrays with C-aligned DMA slabs.
    N, C1, C2, H, W = 2, 32, 16, 16, 16
    v1 = jax.random.normal(keys[0], (N, C1, H, W), dtype=jnp.float32)
    v2 = jax.random.normal(keys[1], (N, C2, H, W), dtype=jnp.float32)
    r1 = jax.random.normal(keys[2], (1, C1, 1, 1), dtype=jnp.float32)
    r2 = jax.random.normal(keys[3], (1, C2, 1, 1), dtype=jnp.float32)

    vout, rout = concat_qat([(v1, r1), (v2, r2)], dimension=1)
    jax.block_until_ready((vout, rout))

    assert vout.shape == (N, C1 + C2, H, W) and vout.dtype == v1.dtype
    assert rout.shape == (1, C1 + C2, 1, 1) and rout.dtype == r1.dtype
    assert jnp.array_equal(vout, jnp.concatenate([v1, v2], axis=1))
    assert jnp.array_equal(rout, jnp.concatenate([r1, r2], axis=1))

    # --- Fallback (NCHW, C-major) path ------------------------------------
    # Unaligned channel counts keep C as a major dim so every slice stays
    # within (8,128) tiles regardless of offsets.
    C3, C4 = 4, 6
    v3 = jax.random.normal(keys[4], (N, C3, H, W), dtype=jnp.float32)
    v4 = jax.random.normal(keys[5], (N, C4, H, W), dtype=jnp.float32)
    r3 = jax.random.normal(keys[6], (1, C3, 1, 1), dtype=jnp.float32)
    r4 = jax.random.normal(keys[7], (1, C4, 1, 1), dtype=jnp.float32)

    vout2, rout2 = concat_qat([(v3, r3), (v4, r4)], dimension=1)
    jax.block_until_ready((vout2, rout2))

    assert jnp.array_equal(vout2, jnp.concatenate([v3, v4], axis=1))
    assert jnp.array_equal(rout2, jnp.concatenate([r3, r4], axis=1))

    print("KERNEL_OK")
</pallas_src>

<mosaic_0001>
module attributes {stable_mosaic.version = 11 : i64} {
  func.func @_concat_dma_kernel(%arg0: memref<2x32x256xf32, #tpu.memory_space<any>>, %arg1: memref<2x16x256xf32, #tpu.memory_space<any>>, %arg2: memref<2x48x256xf32, #tpu.memory_space<any>>, %arg3: memref<6x!tpu.dma_semaphore, #tpu.memory_space<semaphore_mem>>) attributes {dimension_semantics = [], scalar_prefetch = 0 : i64, scratch_operands = 1 : i64, tpu.core_type = #tpu.core_type<tc>} {
    %c0_i32 = arith.constant 0 : i32
    %c0_i32_0 = arith.constant 0 : i32
    %c0_i32_1 = arith.constant 0 : i32
    %c0_i32_2 = arith.constant 0 : i32
    %0 = tpu.memref_slice %arg0[%c0_i32_0, %c0_i32_1, %c0_i32_2] : memref<2x32x256xf32, #tpu.memory_space<any>> -> memref<2x8x256xf32, #tpu.memory_space<any>>
    %c0_i32_3 = arith.constant 0 : i32
    %c0_i32_4 = arith.constant 0 : i32
    %c0_i32_5 = arith.constant 0 : i32
    %1 = tpu.memref_slice %arg2[%c0_i32_3, %c0_i32_4, %c0_i32_5] : memref<2x48x256xf32, #tpu.memory_space<any>> -> memref<2x8x256xf32, #tpu.memory_space<any>>
    %2 = tpu.memref_slice %arg3[%c0_i32] : memref<6x!tpu.dma_semaphore, #tpu.memory_space<semaphore_mem>> -> memref<1x!tpu.dma_semaphore, #tpu.memory_space<semaphore_mem>>
    %3 = tpu.memref_squeeze %2 : memref<1x!tpu.dma_semaphore, #tpu.memory_space<semaphore_mem>> -> memref<!tpu.dma_semaphore, #tpu.memory_space<semaphore_mem>>
    tpu.enqueue_dma source(%0 : memref<2x8x256xf32, #tpu.memory_space<any>>) target(%1 : memref<2x8x256xf32, #tpu.memory_space<any>>) target_semaphore(%3 : memref<!tpu.dma_semaphore, #tpu.memory_space<semaphore_mem>>)
    %c1_i32 = arith.constant 1 : i32
    %c0_i32_6 = arith.constant 0 : i32
    %c8_i32 = arith.constant 8 : i32
    %c0_i32_7 = arith.constant 0 : i32
    %4 = tpu.memref_slice %arg0[%c0_i32_6, %c8_i32, %c0_i32_7] : memref<2x32x256xf32, #tpu.memory_space<any>> -> memref<2x8x256xf32, #tpu.memory_space<any>>
    %c0_i32_8 = arith.constant 0 : i32
    %c8_i32_9 = arith.constant 8 : i32
    %c0_i32_10 = arith.constant 0 : i32
    %5 = tpu.memref_slice %arg2[%c0_i32_8, %c8_i32_9, %c0_i32_10] : memref<2x48x256xf32, #tpu.memory_space<any>> -> memref<2x8x256xf32, #tpu.memory_space<any>>
    %6 = tpu.memref_slice %arg3[%c1_i32] : memref<6x!tpu.dma_semaphore, #tpu.memory_space<semaphore_mem>> -> memref<1x!tpu.dma_semaphore, #tpu.memory_space<semaphore_mem>>
    %7 = tpu.memref_squeeze %6 : memref<1x!tpu.dma_semaphore, #tpu.memory_space<semaphore_mem>> -> memref<!tpu.dma_semaphore, #tpu.memory_space<semaphore_mem>>
    tpu.enqueue_dma source(%4 : memref<2x8x256xf32, #tpu.memory_space<any>>) target(%5 : memref<2x8x256xf32, #tpu.memory_space<any>>) target_semaphore(%7 : memref<!tpu.dma_semaphore, #tpu.memory_space<semaphore_mem>>)
    %c2_i32 = arith.constant 2 : i32
    %c0_i32_11 = arith.constant 0 : i32
    %c16_i32 = arith.constant 16 : i32
    %c0_i32_12 = arith.constant 0 : i32
    %8 = tpu.memref_slice %arg0[%c0_i32_11, %c16_i32, %c0_i32_12] : memref<2x32x256xf32, #tpu.memory_space<any>> -> memref<2x8x256xf32, #tpu.memory_space<any>>
    %c0_i32_13 = arith.constant 0 : i32
    %c16_i32_14 = arith.constant 16 : i32
    %c0_i32_15 = arith.constant 0 : i32
    %9 = tpu.memref_slice %arg2[%c0_i32_13, %c16_i32_14, %c0_i32_15] : memref<2x48x256xf32, #tpu.memory_space<any>> -> memref<2x8x256xf32, #tpu.memory_space<any>>
    %10 = tpu.memref_slice %arg3[%c2_i32] : memref<6x!tpu.dma_semaphore, #tpu.memory_space<semaphore_mem>> -> memref<1x!tpu.dma_semaphore, #tpu.memory_space<semaphore_mem>>
    %11 = tpu.memref_squeeze %10 : memref<1x!tpu.dma_semaphore, #tpu.memory_space<semaphore_mem>> -> memref<!tpu.dma_semaphore, #tpu.memory_space<semaphore_mem>>
    tpu.enqueue_dma source(%8 : memref<2x8x256xf32, #tpu.memory_space<any>>) target(%9 : memref<2x8x256xf32, #tpu.memory_space<any>>) target_semaphore(%11 : memref<!tpu.dma_semaphore, #tpu.memory_space<semaphore_mem>>)
    %c3_i32 = arith.constant 3 : i32
    %c0_i32_16 = arith.constant 0 : i32
    %c24_i32 = arith.constant 24 : i32
    %c0_i32_17 = arith.constant 0 : i32
    %12 = tpu.memref_slice %arg0[%c0_i32_16, %c24_i32, %c0_i32_17] : memref<2x32x256xf32, #tpu.memory_space<any>> -> memref<2x8x256xf32, #tpu.memory_space<any>>
    %c0_i32_18 = arith.constant 0 : i32
    %c24_i32_19 = arith.constant 24 : i32
    %c0_i32_20 = arith.constant 0 : i32
    %13 = tpu.memref_slice %arg2[%c0_i32_18, %c24_i32_19, %c0_i32_20] : memref<2x48x256xf32, #tpu.memory_space<any>> -> memref<2x8x256xf32, #tpu.memory_space<any>>
    %14 = tpu.memref_slice %arg3[%c3_i32] : memref<6x!tpu.dma_semaphore, #tpu.memory_space<semaphore_mem>> -> memref<1x!tpu.dma_semaphore, #tpu.memory_space<semaphore_mem>>
    %15 = tpu.memref_squeeze %14 : memref<1x!tpu.dma_semaphore, #tpu.memory_space<semaphore_mem>> -> memref<!tpu.dma_semaphore, #tpu.memory_space<semaphore_mem>>
    tpu.enqueue_dma source(%12 : memref<2x8x256xf32, #tpu.memory_space<any>>) target(%13 : memref<2x8x256xf32, #tpu.memory_space<any>>) target_semaphore(%15 : memref<!tpu.dma_semaphore, #tpu.memory_space<semaphore_mem>>)
    %c4_i32 = arith.constant 4 : i32
    %c0_i32_21 = arith.constant 0 : i32
    %c0_i32_22 = arith.constant 0 : i32
    %c0_i32_23 = arith.constant 0 : i32
    %16 = tpu.memref_slice %arg1[%c0_i32_21, %c0_i32_22, %c0_i32_23] : memref<2x16x256xf32, #tpu.memory_space<any>> -> memref<2x8x256xf32, #tpu.memory_space<any>>
    %c0_i32_24 = arith.constant 0 : i32
    %c32_i32 = arith.constant 32 : i32
    %c0_i32_25 = arith.constant 0 : i32
    %17 = tpu.memref_slice %arg2[%c0_i32_24, %c32_i32, %c0_i32_25] : memref<2x48x256xf32, #tpu.memory_space<any>> -> memref<2x8x256xf32, #tpu.memory_space<any>>
    %18 = tpu.memref_slice %arg3[%c4_i32] : memref<6x!tpu.dma_semaphore, #tpu.memory_space<semaphore_mem>> -> memref<1x!tpu.dma_semaphore, #tpu.memory_space<semaphore_mem>>
    %19 = tpu.memref_squeeze %18 : memref<1x!tpu.dma_semaphore, #tpu.memory_space<semaphore_mem>> -> memref<!tpu.dma_semaphore, #tpu.memory_space<semaphore_mem>>
    tpu.enqueue_dma source(%16 : memref<2x8x256xf32, #tpu.memory_space<any>>) target(%17 : memref<2x8x256xf32, #tpu.memory_space<any>>) target_semaphore(%19 : memref<!tpu.dma_semaphore, #tpu.memory_space<semaphore_mem>>)
    %c5_i32 = arith.constant 5 : i32
    %c0_i32_26 = arith.constant 0 : i32
    %c8_i32_27 = arith.constant 8 : i32
    %c0_i32_28 = arith.constant 0 : i32
    %20 = tpu.memref_slice %arg1[%c0_i32_26, %c8_i32_27, %c0_i32_28] : memref<2x16x256xf32, #tpu.memory_space<any>> -> memref<2x8x256xf32, #tpu.memory_space<any>>
    %c0_i32_29 = arith.constant 0 : i32
    %c40_i32 = arith.constant 40 : i32
    %c0_i32_30 = arith.constant 0 : i32
    %21 = tpu.memref_slice %arg2[%c0_i32_29, %c40_i32, %c0_i32_30] : memref<2x48x256xf32, #tpu.memory_space<any>> -> memref<2x8x256xf32, #tpu.memory_space<any>>
    %22 = tpu.memref_slice %arg3[%c5_i32] : memref<6x!tpu.dma_semaphore, #tpu.memory_space<semaphore_mem>> -> memref<1x!tpu.dma_semaphore, #tpu.memory_space<semaphore_mem>>
    %23 = tpu.memref_squeeze %22 : memref<1x!tpu.dma_semaphore, #tpu.memory_space<semaphore_mem>> -> memref<!tpu.dma_semaphore, #tpu.memory_space<semaphore_mem>>
    tpu.enqueue_dma source(%20 : memref<2x8x256xf32, #tpu.memory_space<any>>) target(%21 : memref<2x8x256xf32, #tpu.memory_space<any>>) target_semaphore(%23 : memref<!tpu.dma_semaphore, #tpu.memory_space<semaphore_mem>>)
    %c0_i32_31 = arith.constant 0 : i32
    %c0_i32_32 = arith.constant 0 : i32
    %c0_i32_33 = arith.constant 0 : i32
    %c0_i32_34 = arith.constant 0 : i32
    %24 = tpu.memref_slice %arg0[%c0_i32_32, %c0_i32_33, %c0_i32_34] : memref<2x32x256xf32, #tpu.memory_space<any>> -> memref<2x8x256xf32, #tpu.memory_space<any>>
    %c0_i32_35 = arith.constant 0 : i32
    %c0_i32_36 = arith.constant 0 : i32
    %c0_i32_37 = arith.constant 0 : i32
    %25 = tpu.memref_slice %arg2[%c0_i32_35, %c0_i32_36, %c0_i32_37] : memref<2x48x256xf32, #tpu.memory_space<any>> -> memref<2x8x256xf32, #tpu.memory_space<any>>
    %26 = tpu.memref_slice %arg3[%c0_i32_31] : memref<6x!tpu.dma_semaphore, #tpu.memory_space<semaphore_mem>> -> memref<1x!tpu.dma_semaphore, #tpu.memory_space<semaphore_mem>>
    %27 = tpu.memref_squeeze %26 : memref<1x!tpu.dma_semaphore, #tpu.memory_space<semaphore_mem>> -> memref<!tpu.dma_semaphore, #tpu.memory_space<semaphore_mem>>
    tpu.wait_dma2 semaphore(%27 : memref<!tpu.dma_semaphore, #tpu.memory_space<semaphore_mem>>) src(%24 : memref<2x8x256xf32, #tpu.memory_space<any>>) dst(%25 : memref<2x8x256xf32, #tpu.memory_space<any>>)
    %c1_i32_38 = arith.constant 1 : i32
    %c0_i32_39 = arith.constant 0 : i32
    %c8_i32_40 = arith.constant 8 : i32
    %c0_i32_41 = arith.constant 0 : i32
    %28 = tpu.memref_slice %arg0[%c0_i32_39, %c8_i32_40, %c0_i32_41] : memref<2x32x256xf32, #tpu.memory_space<any>> -> memref<2x8x256xf32, #tpu.memory_space<any>>
    %c0_i32_42 = arith.constant 0 : i32
    %c8_i32_43 = arith.constant 8 : i32
    %c0_i32_44 = arith.constant 0 : i32
    %29 = tpu.memref_slice %arg2[%c0_i32_42, %c8_i32_43, %c0_i32_44] : memref<2x48x256xf32, #tpu.memory_space<any>> -> memref<2x8x256xf32, #tpu.memory_space<any>>
    %30 = tpu.memref_slice %arg3[%c1_i32_38] : memref<6x!tpu.dma_semaphore, #tpu.memory_space<semaphore_mem>> -> memref<1x!tpu.dma_semaphore, #tpu.memory_space<semaphore_mem>>
    %31 = tpu.memref_squeeze %30 : memref<1x!tpu.dma_semaphore, #tpu.memory_space<semaphore_mem>> -> memref<!tpu.dma_semaphore, #tpu.memory_space<semaphore_mem>>
    tpu.wait_dma2 semaphore(%31 : memref<!tpu.dma_semaphore, #tpu.memory_space<semaphore_mem>>) src(%28 : memref<2x8x256xf32, #tpu.memory_space<any>>) dst(%29 : memref<2x8x256xf32, #tpu.memory_space<any>>)
    %c2_i32_45 = arith.constant 2 : i32
    %c0_i32_46 = arith.constant 0 : i32
    %c16_i32_47 = arith.constant 16 : i32
    %c0_i32_48 = arith.constant 0 : i32
    %32 = tpu.memref_slice %arg0[%c0_i32_46, %c16_i32_47, %c0_i32_48] : memref<2x32x256xf32, #tpu.memory_space<any>> -> memref<2x8x256xf32, #tpu.memory_space<any>>
    %c0_i32_49 = arith.constant 0 : i32
    %c16_i32_50 = arith.constant 16 : i32
    %c0_i32_51 = arith.constant 0 : i32
    %33 = tpu.memref_slice %arg2[%c0_i32_49, %c16_i32_50, %c0_i32_51] : memref<2x48x256xf32, #tpu.memory_space<any>> -> memref<2x8x256xf32, #tpu.memory_space<any>>
    %34 = tpu.memref_slice %arg3[%c2_i32_45] : memref<6x!tpu.dma_semaphore, #tpu.memory_space<semaphore_mem>> -> memref<1x!tpu.dma_semaphore, #tpu.memory_space<semaphore_mem>>
    %35 = tpu.memref_squeeze %34 : memref<1x!tpu.dma_semaphore, #tpu.memory_space<semaphore_mem>> -> memref<!tpu.dma_semaphore, #tpu.memory_space<semaphore_mem>>
    tpu.wait_dma2 semaphore(%35 : memref<!tpu.dma_semaphore, #tpu.memory_space<semaphore_mem>>) src(%32 : memref<2x8x256xf32, #tpu.memory_space<any>>) dst(%33 : memref<2x8x256xf32, #tpu.memory_space<any>>)
    %c3_i32_52 = arith.constant 3 : i32
    %c0_i32_53 = arith.constant 0 : i32
    %c24_i32_54 = arith.constant 24 : i32
    %c0_i32_55 = arith.constant 0 : i32
    %36 = tpu.memref_slice %arg0[%c0_i32_53, %c24_i32_54, %c0_i32_55] : memref<2x32x256xf32, #tpu.memory_space<any>> -> memref<2x8x256xf32, #tpu.memory_space<any>>
    %c0_i32_56 = arith.constant 0 : i32
    %c24_i32_57 = arith.constant 24 : i32
    %c0_i32_58 = arith.constant 0 : i32
    %37 = tpu.memref_slice %arg2[%c0_i32_56, %c24_i32_57, %c0_i32_58] : memref<2x48x256xf32, #tpu.memory_space<any>> -> memref<2x8x256xf32, #tpu.memory_space<any>>
    %38 = tpu.memref_slice %arg3[%c3_i32_52] : memref<6x!tpu.dma_semaphore, #tpu.memory_space<semaphore_mem>> -> memref<1x!tpu.dma_semaphore, #tpu.memory_space<semaphore_mem>>
    %39 = tpu.memref_squeeze %38 : memref<1x!tpu.dma_semaphore, #tpu.memory_space<semaphore_mem>> -> memref<!tpu.dma_semaphore, #tpu.memory_space<semaphore_mem>>
    tpu.wait_dma2 semaphore(%39 : memref<!tpu.dma_semaphore, #tpu.memory_space<semaphore_mem>>) src(%36 : memref<2x8x256xf32, #tpu.memory_space<any>>) dst(%37 : memref<2x8x256xf32, #tpu.memory_space<any>>)
    %c4_i32_59 = arith.constant 4 : i32
    %c0_i32_60 = arith.constant 0 : i32
    %c0_i32_61 = arith.constant 0 : i32
    %c0_i32_62 = arith.constant 0 : i32
    %40 = tpu.memref_slice %arg1[%c0_i32_60, %c0_i32_61, %c0_i32_62] : memref<2x16x256xf32, #tpu.memory_space<any>> -> memref<2x8x256xf32, #tpu.memory_space<any>>
    %c0_i32_63 = arith.constant 0 : i32
    %c32_i32_64 = arith.constant 32 : i32
    %c0_i32_65 = arith.constant 0 : i32
    %41 = tpu.memref_slice %arg2[%c0_i32_63, %c32_i32_64, %c0_i32_65] : memref<2x48x256xf32, #tpu.memory_space<any>> -> memref<2x8x256xf32, #tpu.memory_space<any>>
    %42 = tpu.memref_slice %arg3[%c4_i32_59] : memref<6x!tpu.dma_semaphore, #tpu.memory_space<semaphore_mem>> -> memref<1x!tpu.dma_semaphore, #tpu.memory_space<semaphore_mem>>
    %43 = tpu.memref_squeeze %42 : memref<1x!tpu.dma_semaphore, #tpu.memory_space<semaphore_mem>> -> memref<!tpu.dma_semaphore, #tpu.memory_space<semaphore_mem>>
    tpu.wait_dma2 semaphore(%43 : memref<!tpu.dma_semaphore, #tpu.memory_space<semaphore_mem>>) src(%40 : memref<2x8x256xf32, #tpu.memory_space<any>>) dst(%41 : memref<2x8x256xf32, #tpu.memory_space<any>>)
    %c5_i32_66 = arith.constant 5 : i32
    %c0_i32_67 = arith.constant 0 : i32
    %c8_i32_68 = arith.constant 8 : i32
    %c0_i32_69 = arith.constant 0 : i32
    %44 = tpu.memref_slice %arg1[%c0_i32_67, %c8_i32_68, %c0_i32_69] : memref<2x16x256xf32, #tpu.memory_space<any>> -> memref<2x8x256xf32, #tpu.memory_space<any>>
    %c0_i32_70 = arith.constant 0 : i32
    %c40_i32_71 = arith.constant 40 : i32
    %c0_i32_72 = arith.constant 0 : i32
    %45 = tpu.memref_slice %arg2[%c0_i32_70, %c40_i32_71, %c0_i32_72] : memref<2x48x256xf32, #tpu.memory_space<any>> -> memref<2x8x256xf32, #tpu.memory_space<any>>
    %46 = tpu.memref_slice %arg3[%c5_i32_66] : memref<6x!tpu.dma_semaphore, #tpu.memory_space<semaphore_mem>> -> memref<1x!tpu.dma_semaphore, #tpu.memory_space<semaphore_mem>>
    %47 = tpu.memref_squeeze %46 : memref<1x!tpu.dma_semaphore, #tpu.memory_space<semaphore_mem>> -> memref<!tpu.dma_semaphore, #tpu.memory_space<semaphore_mem>>
    tpu.wait_dma2 semaphore(%47 : memref<!tpu.dma_semaphore, #tpu.memory_space<semaphore_mem>>) src(%44 : memref<2x8x256xf32, #tpu.memory_space<any>>) dst(%45 : memref<2x8x256xf32, #tpu.memory_space<any>>)
    return
  }
}

</mosaic_0001>

<bundles_post_ra>
// kernel: tpu_custom_call.1
= control target key start
LH: loop header
LB: loop body
LE: loop exit
PB: predicated region body
PF: predicated region fallthrough
CT: control target
= control target key end

     0   :  { %s185_s9 = smov 1024   ;;  %s186_s10 = smov 1536   ;;  %s272_s0 = inlined_call_operand.hbm [shape: f32[2,32,256], index: 0, kind: input, shape index: {}]   ;;  %s273_s1 = inlined_call_operand.hbm [shape: f32[2,16,256], index: 1, kind: input, shape index: {}]   ;;  %s274_s2 = inlined_call_operand.hbm [shape: f32[2,48,256], index: 2, kind: output, shape index: {}]  }
   0x1   :  { %13 = sst [smem:[#allocation4]] %s185_s9  ;;  %s187_s11 = smov 16  }
   0x2   :  { %15 = sst [smem:[#allocation4 + $0x1]] %s186_s10  ;;  %s20_s14 = scalar_lea.hbm %s272_s0, 256 }
   0x3   :  { %17 = sst [smem:[#allocation4 + $0x2]] %s187_s11  ;;  %s188_s15 = smov [#allocation2]  }
   0x4   :  { %s189_s16 = smov 131072   ;;  %s190_s17 = smov 0  }
   0x5   :  { %19 = dma.general %s272_s0, 512, %s274_s2, %s188_s15, %s189_s16, [#allocation4], %s190_s17, 0  }
   0x6   :  { %29 = sst [smem:[#allocation6]] %s185_s9  ;;  %s21_s24 = scalar_lea.hbm %s274_s2, 256 }
   0x7   :  { %31 = sst [smem:[#allocation6 + $0x1]] %s186_s10  ;;  %s36_s27 = scalar_lea.hbm %s272_s0, 512 }
   0x8   :  { %33 = sst [smem:[#allocation6 + $0x2]] %s187_s11  ;;  %s191_s28 = smov [#allocation2 + $0x1]  }
   0x9   :  { %35 = dma.general %s20_s14, 512, %s21_s24, %s191_s28, %s189_s16, [#allocation6], %s190_s17, 0  }
   0xa   :  { %45 = sst [smem:[#allocation8]] %s185_s9  ;;  %s37_s3 = scalar_lea.hbm %s274_s2, 512 }
   0xb   :  { %47 = sst [smem:[#allocation8 + $0x1]] %s186_s10  ;;  %s52_s6 = scalar_lea.hbm %s272_s0, 768 }
   0xc   :  { %49 = sst [smem:[#allocation8 + $0x2]] %s187_s11  ;;  %s192_s7 = smov [#allocation2 + $0x2]  }
   0xd   :  { %51 = dma.general %s36_s27, 512, %s37_s3, %s192_s7, %s189_s16, [#allocation8], %s190_s17, 0  }
   0xe   :  { %61 = sst [smem:[#allocation10]] %s185_s9  ;;  %s53_s13 = scalar_lea.hbm %s274_s2, 768 }
   0xf   :  { %63 = sst [smem:[#allocation10 + $0x1]] %s186_s10  ;;  %s193_s14 = smov [#allocation2 + $0x3]  }
  0x10   :  { %65 = sst [smem:[#allocation10 + $0x2]] %s187_s11  ;;  %s194_s15 = smov 512  }
  0x11   :  { %67 = dma.general %s52_s6, 512, %s53_s13, %s193_s14, %s189_s16, [#allocation10], %s190_s17, 0  }
  0x12   :  { %76 = sst [smem:[#allocation12]] %s194_s15  ;;  %s68_s19 = scalar_lea.hbm %s274_s2, 1024 }
  0x13   :  { %78 = sst [smem:[#allocation12 + $0x1]] %s186_s10  ;;  %s83_s21 = scalar_lea.hbm %s273_s1, 256 }
  0x14   :  { %80 = sst [smem:[#allocation12 + $0x2]] %s187_s11  ;;  %s195_s22 = smov [#allocation2 + $0x4]  }
  0x15   :  { %82 = dma.general %s273_s1, 512, %s68_s19, %s195_s22, %s189_s16, [#allocation12], %s190_s17, 0  }
  0x16   :  { %92 = sst [smem:[#allocation14]] %s194_s15  ;;  %s84_s27 = scalar_lea.hbm %s274_s2, 1280 }
  0x17   :  { %94 = sst [smem:[#allocation14 + $0x1]] %s186_s10  ;;  %s196_s28 = smov [#allocation2 + $0x5]  }
  0x18   :  { %96 = sst [smem:[#allocation14 + $0x2]] %s187_s11 }
  0x19   :  { %98 = dma.general %s83_s21, 512, %s84_s27, %s196_s28, %s189_s16, [#allocation14], %s190_s17, 0  }
  0x1a   :  { %173 = dma.done.wait [#allocation2], 512 }
  0x1b   :  { %174 = vsyncadd [#allocation2], 4294966784 }
  0x1c   :  { %175 = dma.done.wait [#allocation2 + $0x1], 512 }
  0x1d   :  { %176 = vsyncadd [#allocation2 + $0x1], 4294966784 }
  0x1e   :  { %177 = dma.done.wait [#allocation2 + $0x2], 512 }
  0x1f   :  { %178 = vsyncadd [#allocation2 + $0x2], 4294966784 }
  0x20   :  { %179 = dma.done.wait [#allocation2 + $0x3], 512 }
  0x21   :  { %180 = vsyncadd [#allocation2 + $0x3], 4294966784 }
  0x22   :  { %181 = dma.done.wait [#allocation2 + $0x4], 512 }
  0x23   :  { %182 = vsyncadd [#allocation2 + $0x4], 4294966784 }
  0x24   :  { %183 = dma.done.wait [#allocation2 + $0x5], 512 }
  0x25   :  { %184 = vsyncadd [#allocation2 + $0x5], 4294966784 }
  0x26   :  { %114 = vsyncmov [#allocation2] }
  0x29   :  { %s115_s1 = vpop.sfrf %114 }
  0x2a   :  { %p155_p0 = scmp.ne.s32.totalorder %s115_s1, 0 }
  0x2c   :  { %119 = shalt.err (%p155_p0)  }
  0x2d   :  { %121 = vsyncmov [#allocation2 + $0x1] }
  0x30   :  { %s122_s2 = vpop.sfrf %121 }
  0x31   :  { %p156_p1 = scmp.ne.s32.totalorder %s122_s2, 0 }
  0x33   :  { %126 = shalt.err (%p156_p1)  }
  0x34   :  { %128 = vsyncmov [#allocation2 + $0x2] }
  0x37   :  { %s129_s10 = vpop.sfrf %128 }
  0x38   :  { %p157_p2 = scmp.ne.s32.totalorder %s129_s10, 0 }
  0x3a   :  { %133 = shalt.err (%p157_p2)  }
  0x3b   :  { %135 = vsyncmov [#allocation2 + $0x3] }
  0x3e   :  { %s136_s11 = vpop.sfrf %135 }
  0x3f   :  { %p158_p3 = scmp.ne.s32.totalorder %s136_s11, 0 }
  0x41   :  { %140 = shalt.err (%p158_p3)  }
  0x42   :  { %142 = vsyncmov [#allocation2 + $0x4] }
  0x45   :  { %s143_s16 = vpop.sfrf %142 }
  0x46   :  { %p159_p4 = scmp.ne.s32.totalorder %s143_s16, 0 }
  0x48   :  { %147 = shalt.err (%p159_p4)  }
  0x49   :  { %149 = vsyncmov [#allocation2 + $0x5] }
  0x4c   :  { %s150_s17 = vpop.sfrf %149 }
  0x4d   :  { %p160_p5 = scmp.ne.s32.totalorder %s150_s17, 0 }
  0x4f   :  { %154 = shalt.err (%p160_p5)  }

</bundles_post_ra>
